<compile_context>
chip_gen: v7x
topology: tpu7x:2x2x1
jax: 0.10.0
libtpu: 0.0.40
codegen_flags: <defaults>
</compile_context>

<pallas_src>
import jax
import jax.numpy as jnp
from jax.experimental import pallas as pl
from jax.experimental.pallas import tpu as pltpu

BN_EPS = 1e-5
HIDDEN_PAD = 128  # lane-dense padded hidden width


def _disc_embedding_kernel(
    x_ref,                      # [B, D]
    w1_ref, g1_ref, be1_ref,    # fc1 weight + bn1 gamma/beta (padded to HIDDEN_PAD)
    w2_ref, g2_ref, be2_ref,    # fc2 weight + bn2 gamma/beta (padded to HIDDEN_PAD)
    w3_ref, b3_ref,             # fc3 weight row [1, HIDDEN_PAD], bias [1, 1]
    o_ref,                      # [B, 1]
):
    x = x_ref[...]              # already f32, no astype needed
    inv_b = 1.0 / x.shape[0]

    def fused_bn_relu(h, gamma, beta):
        # Two independent sublane reductions -> single normalize+affine+ReLU pass.
        s = jnp.sum(h, axis=0, keepdims=True)
        ss = jnp.sum(h * h, axis=0, keepdims=True)
        mean = s * inv_b
        var = ss * inv_b - mean * mean
        scale = gamma * jax.lax.rsqrt(var + BN_EPS)   # EUP rsqrt
        shift = beta - mean * scale
        return jnp.maximum(h * scale + shift, 0.0)

    # ----- fc1 -> bn1 -> relu (linear bias cancelled by BN mean subtraction) -----
    h = jnp.dot(x, w1_ref[...], preferred_element_type=jnp.float32)
    h = fused_bn_relu(h, g1_ref[...], be1_ref[...])

    # ----- fc2 -> bn2 -> relu (linear bias cancelled by BN mean subtraction) -----
    h = jnp.dot(h, w2_ref[...], preferred_element_type=jnp.float32)
    h = fused_bn_relu(h, g2_ref[...], be2_ref[...])

    # ----- fc3 (N=1) as VPU multiply + lane reduce, then sigmoid -----
    logit = jnp.sum(h * w3_ref[...], axis=-1, keepdims=True) + b3_ref[...]
    o_ref[...] = jax.nn.sigmoid(logit).astype(o_ref.dtype)


def discriminator_embedding_forward(x, padded_params):
    """x: [B, input_size] float32 -> [B, 1] float32 (sigmoid probabilities)."""
    B = x.shape[0]
    vmem = pl.BlockSpec(memory_space=pltpu.MemorySpace.VMEM)
    n_inputs = 1 + len(padded_params)
    return pl.pallas_call(
        _disc_embedding_kernel,
        out_shape=jax.ShapeDtypeStruct((B, 1), jnp.float32),
        in_specs=[vmem] * n_inputs,
        out_specs=vmem,
        compiler_params=pltpu.CompilerParams(vmem_limit_bytes=32 << 20),
    )(x, *padded_params)


discriminator_embedding_forward = jax.jit(discriminator_embedding_forward)


def init_params(key, input_size=128):
    """Deterministic synthetic parameter init (shapes match the PyTorch module)."""
    hidden_size = input_size // 2
    k1, k2, k3 = jax.random.split(key, 3)

    def linear(k, fan_in, fan_out):
        bound = 1.0 / jnp.sqrt(fan_in)
        kw, kb = jax.random.split(k)
        # stored transposed vs. PyTorch: [in, out] so kernel does x @ W
        w = jax.random.uniform(kw, (fan_in, fan_out), jnp.float32, -bound, bound)
        b = jax.random.uniform(kb, (1, fan_out), jnp.float32, -bound, bound)
        return w, b

    w1, b1 = linear(k1, input_size, hidden_size)
    w2, b2 = linear(k2, hidden_size, hidden_size)
    w3, b3 = linear(k3, hidden_size, 1)

    g1 = jnp.ones((1, hidden_size), jnp.float32)
    be1 = jnp.zeros((1, hidden_size), jnp.float32)
    g2 = jnp.ones((1, hidden_size), jnp.float32)
    be2 = jnp.zeros((1, hidden_size), jnp.float32)

    return (w1, b1, g1, be1, w2, b2, g2, be2, w3, b3)


def pad_params(params, hidden_pad=HIDDEN_PAD):
    """Zero-pad hidden dim to `hidden_pad` for lane-dense vregs.

    Zero pads on weights / gamma / beta guarantee the padded features stay
    exactly 0 through fc1->bn1->relu->fc2->bn2->relu and contribute nothing to
    the fc3 logit, so the result is numerically unchanged.

    fc1/fc2 biases are intentionally omitted from the padded set: BatchNorm1d
    subtracts the batch mean immediately after each linear, so a per-feature
    bias added before BN cancels exactly and never affects the output.
    """
    w1, _b1, g1, be1, w2, _b2, g2, be2, w3, b3 = params
    hidden = w1.shape[1]
    p = hidden_pad - hidden
    assert p >= 0

    def pad_cols(a):
        return jnp.pad(a, ((0, 0), (0, p)))

    w1p = pad_cols(w1)
    g1p, be1p = pad_cols(g1), pad_cols(be1)
    w2p = jnp.pad(w2, ((0, p), (0, p)))
    g2p, be2p = pad_cols(g2), pad_cols(be2)
    w3_row = jnp.pad(w3.T, ((0, 0), (0, p)))          # [1, hidden_pad]
    b3p = b3.reshape(1, 1)
    return (w1p, g1p, be1p, w2p, g2p, be2p, w3_row, b3p)


def _reference_forward(x, params):
    """Pure-JAX reference (two-pass BN, biases included) on unpadded params."""
    w1, b1, g1, be1, w2, b2, g2, be2, w3, b3 = params

    def bn_relu(h, g, be):
        m = jnp.mean(h, axis=0, keepdims=True)
        v = jnp.mean((h - m) ** 2, axis=0, keepdims=True)
        return jnp.maximum((h - m) / jnp.sqrt(v + BN_EPS) * g + be, 0.0)

    h = bn_relu(x @ w1 + b1, g1, be1)
    h = bn_relu(h @ w2 + b2, g2, be2)
    return jax.nn.sigmoid(h @ w3 + b3)


if __name__ == "__main__":
    key = jax.random.PRNGKey(0)
    k_x, k_p = jax.random.split(key)

    input_size = 128
    batch = 8
    x = jax.random.normal(k_x, (batch, input_size), jnp.float32)
    params = init_params(k_p, input_size=input_size)
    padded = pad_params(params)

    out = discriminator_embedding_forward(x, padded)
    out = jax.block_until_ready(out)

    ref = _reference_forward(x, params)
    assert out.shape == (batch, 1), out.shape
    assert jnp.allclose(out, ref, atol=3e-5, rtol=3e-5), (
        f"max abs err {jnp.max(jnp.abs(out - ref))}"
    )

    print("KERNEL_OK")
</pallas_src>

<mosaic_0001>
module attributes {stable_mosaic.version = 11 : i64} {
  func.func @_disc_embedding_kernel(%arg0: memref<8x128xf32, #tpu.memory_space<vmem>>, %arg1: memref<128x128xf32, #tpu.memory_space<vmem>>, %arg2: memref<1x128xf32, #tpu.memory_space<vmem>>, %arg3: memref<1x128xf32, #tpu.memory_space<vmem>>, %arg4: memref<128x128xf32, #tpu.memory_space<vmem>>, %arg5: memref<1x128xf32, #tpu.memory_space<vmem>>, %arg6: memref<1x128xf32, #tpu.memory_space<vmem>>, %arg7: memref<1x128xf32, #tpu.memory_space<vmem>>, %arg8: memref<1x1xf32, #tpu.memory_space<vmem>>, %arg9: memref<8x1xf32, #tpu.memory_space<vmem>>) attributes {dimension_semantics = [], scalar_prefetch = 0 : i64, scratch_operands = 0 : i64, tpu.core_type = #tpu.core_type<tc>} {
    %c0 = arith.constant 0 : index
    %c0_0 = arith.constant 0 : index
    %0 = vector.load %arg0[%c0, %c0_0] : memref<8x128xf32, #tpu.memory_space<vmem>>, vector<8x128xf32>
    %c0_1 = arith.constant 0 : index
    %c0_2 = arith.constant 0 : index
    %1 = vector.load %arg1[%c0_1, %c0_2] : memref<128x128xf32, #tpu.memory_space<vmem>>, vector<128x128xf32>
    %cst = arith.constant dense<0.000000e+00> : vector<8x128xf32>
    %2 = tpu.matmul %0, %1, %cst {dimension_numbers = #tpu.dot_dimension_numbers<[1], [0], [0], [1], [0, 0, 1, 1], [], []>} : vector<8x128xf32>, vector<128x128xf32>, vector<8x128xf32> -> vector<8x128xf32>
    %c0_3 = arith.constant 0 : index
    %c0_4 = arith.constant 0 : index
    %3 = vector.load %arg2[%c0_3, %c0_4] : memref<1x128xf32, #tpu.memory_space<vmem>>, vector<1x128xf32>
    %c0_5 = arith.constant 0 : index
    %c0_6 = arith.constant 0 : index
    %4 = vector.load %arg3[%c0_5, %c0_6] : memref<1x128xf32, #tpu.memory_space<vmem>>, vector<1x128xf32>
    %cst_7 = arith.constant dense<0.000000e+00> : vector<128xf32>
    %5 = vector.multi_reduction <add>, %2, %cst_7 [0] : vector<8x128xf32> to vector<128xf32>
    %6 = vector.shape_cast %5 : vector<128xf32> to vector<1x128xf32>
    %7 = arith.mulf %2, %2 : vector<8x128xf32>
    %cst_8 = arith.constant dense<0.000000e+00> : vector<128xf32>
    %8 = vector.multi_reduction <add>, %7, %cst_8 [0] : vector<8x128xf32> to vector<128xf32>
    %9 = vector.shape_cast %8 : vector<128xf32> to vector<1x128xf32>
    %cst_9 = arith.constant 1.250000e-01 : f32
    %10 = vector.broadcast %cst_9 : f32 to vector<1x128xf32>
    %11 = arith.mulf %6, %10 : vector<1x128xf32>
    %cst_10 = arith.constant 1.250000e-01 : f32
    %12 = vector.broadcast %cst_10 : f32 to vector<1x128xf32>
    %13 = arith.mulf %9, %12 : vector<1x128xf32>
    %14 = arith.mulf %11, %11 : vector<1x128xf32>
    %15 = arith.subf %13, %14 : vector<1x128xf32>
    %cst_11 = arith.constant 9.99999974E-6 : f32
    %16 = vector.broadcast %cst_11 : f32 to vector<1x128xf32>
    %17 = arith.addf %15, %16 : vector<1x128xf32>
    %18 = math.rsqrt %17 : vector<1x128xf32>
    %19 = arith.mulf %3, %18 : vector<1x128xf32>
    %20 = arith.mulf %11, %19 : vector<1x128xf32>
    %21 = arith.subf %4, %20 : vector<1x128xf32>
    %22 = vector.broadcast %19 : vector<1x128xf32> to vector<8x128xf32>
    %23 = arith.mulf %2, %22 : vector<8x128xf32>
    %24 = vector.broadcast %21 : vector<1x128xf32> to vector<8x128xf32>
    %25 = arith.addf %23, %24 : vector<8x128xf32>
    %cst_12 = arith.constant 0.000000e+00 : f32
    %26 = vector.broadcast %cst_12 : f32 to vector<8x128xf32>
    %27 = arith.maximumf %25, %26 : vector<8x128xf32>
    %c0_13 = arith.constant 0 : index
    %c0_14 = arith.constant 0 : index
    %28 = vector.load %arg4[%c0_13, %c0_14] : memref<128x128xf32, #tpu.memory_space<vmem>>, vector<128x128xf32>
    %cst_15 = arith.constant dense<0.000000e+00> : vector<8x128xf32>
    %29 = tpu.matmul %27, %28, %cst_15 {dimension_numbers = #tpu.dot_dimension_numbers<[1], [0], [0], [1], [0, 0, 1, 1], [], []>} : vector<8x128xf32>, vector<128x128xf32>, vector<8x128xf32> -> vector<8x128xf32>
    %c0_16 = arith.constant 0 : index
    %c0_17 = arith.constant 0 : index
    %30 = vector.load %arg5[%c0_16, %c0_17] : memref<1x128xf32, #tpu.memory_space<vmem>>, vector<1x128xf32>
    %c0_18 = arith.constant 0 : index
    %c0_19 = arith.constant 0 : index
    %31 = vector.load %arg6[%c0_18, %c0_19] : memref<1x128xf32, #tpu.memory_space<vmem>>, vector<1x128xf32>
    %cst_20 = arith.constant dense<0.000000e+00> : vector<128xf32>
    %32 = vector.multi_reduction <add>, %29, %cst_20 [0] : vector<8x128xf32> to vector<128xf32>
    %33 = vector.shape_cast %32 : vector<128xf32> to vector<1x128xf32>
    %34 = arith.mulf %29, %29 : vector<8x128xf32>
    %cst_21 = arith.constant dense<0.000000e+00> : vector<128xf32>
    %35 = vector.multi_reduction <add>, %34, %cst_21 [0] : vector<8x128xf32> to vector<128xf32>
    %36 = vector.shape_cast %35 : vector<128xf32> to vector<1x128xf32>
    %cst_22 = arith.constant 1.250000e-01 : f32
    %37 = vector.broadcast %cst_22 : f32 to vector<1x128xf32>
    %38 = arith.mulf %33, %37 : vector<1x128xf32>
    %cst_23 = arith.constant 1.250000e-01 : f32
    %39 = vector.broadcast %cst_23 : f32 to vector<1x128xf32>
    %40 = arith.mulf %36, %39 : vector<1x128xf32>
    %41 = arith.mulf %38, %38 : vector<1x128xf32>
    %42 = arith.subf %40, %41 : vector<1x128xf32>
    %cst_24 = arith.constant 9.99999974E-6 : f32
    %43 = vector.broadcast %cst_24 : f32 to vector<1x128xf32>
    %44 = arith.addf %42, %43 : vector<1x128xf32>
    %45 = math.rsqrt %44 : vector<1x128xf32>
    %46 = arith.mulf %30, %45 : vector<1x128xf32>
    %47 = arith.mulf %38, %46 : vector<1x128xf32>
    %48 = arith.subf %31, %47 : vector<1x128xf32>
    %49 = vector.broadcast %46 : vector<1x128xf32> to vector<8x128xf32>
    %50 = arith.mulf %29, %49 : vector<8x128xf32>
    %51 = vector.broadcast %48 : vector<1x128xf32> to vector<8x128xf32>
    %52 = arith.addf %50, %51 : vector<8x128xf32>
    %cst_25 = arith.constant 0.000000e+00 : f32
    %53 = vector.broadcast %cst_25 : f32 to vector<8x128xf32>
    %54 = arith.maximumf %52, %53 : vector<8x128xf32>
    %c0_26 = arith.constant 0 : index
    %c0_27 = arith.constant 0 : index
    %55 = vector.load %arg7[%c0_26, %c0_27] : memref<1x128xf32, #tpu.memory_space<vmem>>, vector<1x128xf32>
    %56 = vector.broadcast %55 : vector<1x128xf32> to vector<8x128xf32>
    %57 = arith.mulf %54, %56 : vector<8x128xf32>
    %cst_28 = arith.constant dense<0.000000e+00> : vector<8xf32>
    %58 = vector.multi_reduction <add>, %57, %cst_28 [1] : vector<8x128xf32> to vector<8xf32>
    %59 = vector.shape_cast %58 : vector<8xf32> to vector<8x1xf32>
    %c0_29 = arith.constant 0 : index
    %c0_30 = arith.constant 0 : index
    %60 = vector.load %arg8[%c0_29, %c0_30] : memref<1x1xf32, #tpu.memory_space<vmem>>, vector<1x1xf32>
    %61 = vector.broadcast %60 : vector<1x1xf32> to vector<8x1xf32>
    %62 = arith.addf %59, %61 : vector<8x1xf32>
    %63 = arith.negf %62 : vector<8x1xf32>
    %64 = math.exp %63 : vector<8x1xf32>
    %cst_31 = arith.constant 1.000000e+00 : f32
    %65 = vector.broadcast %cst_31 : f32 to vector<8x1xf32>
    %66 = arith.addf %65, %64 : vector<8x1xf32>
    %67 = arith.divf %65, %66 : vector<8x1xf32>
    %c0_32 = arith.constant 0 : index
    %c0_33 = arith.constant 0 : index
    %68 = vector.load %arg9[%c0_32, %c0_33] : memref<8x1xf32, #tpu.memory_space<vmem>>, vector<8x1xf32>
    tpu.vector_store %arg9[%c0_32, %c0_33], %67 {strides = array<i32>} : memref<8x1xf32, #tpu.memory_space<vmem>>, vector<8x1xf32>,
    return
  }
}

</mosaic_0001>

<bundles_post_ra>
// kernel: discriminator_embedding_forward.1
= control target key start
LH: loop header
LB: loop body
LE: loop exit
PB: predicated region body
PF: predicated region fallthrough
CT: control target
= control target key end

     0   :  { %s734_s0 = inlined_call_operand.hbm [shape: f32[8,128], index: 0, kind: input, shape index: {}]   ;;  %s735_s1 = inlined_call_operand.hbm [shape: f32[128,128], index: 1, kind: input, shape index: {}]   ;;  %s736_s2 = inlined_call_operand.vmem [shape: f32[1,128], index: 2, kind: input, shape index: {}]   ;;  %s737_s3 = inlined_call_operand.vmem [shape: f32[1,128], index: 3, kind: input, shape index: {}]   ;;  %s738_s4 = inlined_call_operand.hbm [shape: f32[128,128], index: 4, kind: input, shape index: {}]   ;;  %s739_s5 = inlined_call_operand.vmem [shape: f32[1,128], index: 5, kind: input, shape index: {}]   ;;  %s740_s6 = inlined_call_operand.vmem [shape: f32[1,128], index: 6, kind: input, shape index: {}]   ;;  %s741_s7 = inlined_call_operand.vmem [shape: f32[1,128], index: 7, kind: input, shape index: {}]   ;;  %s742_s8 = inlined_call_operand.<no memory space> [shape: f32[1,1], index: 8, kind: input, shape index: {}]   ;;  %s743_s9 = inlined_call_operand.vmem [shape: f32[8,1], index: 9, kind: output, shape index: {}]  }
   0x1   :  { %v14_v0 = vstv %s742_s8 }
   0x2   :  { %15 = vst [vmem:[#allocation2] sm:$0x1] %v14_v0 }
   0x3   :  { %16 = vsyncpa [#allocation4], 0 }
   0x4   :  { %17 = vsyncpa [#allocation6], 0  ;;  %s597_s11 = smov [#allocation5]   ;;  %s527_s15 = scalar_lea.hbm %s735_s1, 2048 }
   0x5   :  { %s33_s12 = sshll.u32 %s597_s11, 4  ;;  %p528_p0 = scmp.ne.s32.totalorder %s735_s1, %s527_s15  ;;  %s34_s12 = int_to_ptr.vmem [resolvable:$true] %s33_s12 }
   0x6   :  { %p531_p1 = scmp.lt.u32.totalorder %s527_s15, %s735_s1 }
   0x8   :  { %p533_p2 = pnand %p531_p1, %p528_p0 }
   0xa   :  { %536 = shalt.err (!%p533_p2)
}
   0xb   :  { %s537_s8 = scalar_lea.vmem %s34_s12, 2048  ;;  %p542_p4 = scmp.lt.s32.totalorder %s34_s12, %s34_s12 }
   0xc   :  { %p538_p3 = scmp.ne.s32.totalorder %s34_s12, %s537_s8  ;;  %p543_p5 = scmp.lt.s32.totalorder %s537_s8, %s537_s8 }
   0xe   :  { %p544_p6 = por %p543_p5, %p542_p4 }
  0x10   :  { %p545_p7 = pnand %p544_p6, %p538_p3 }
  0x12   :  { %548 = shalt.err (!%p545_p7)
}
  0x13   :  { %s598_s20 = smov 128   ;;  %s599_s21 = smov 8  }
  0x14   :  { %39 = dma.hbm_to_vmem [thread:$0]  %s735_s1, 2048, %s34_s12, [#allocation6], %s598_s20, %s598_s20, %s599_s21  }
  0x15   :  { %s600_s24 = smov [#allocation3]   ;;  %s601_s26 = smov [#allocation7]  }
  0x16   :  { %s24_s25 = sshll.u32 %s600_s24, 4  ;;  %s49_s27 = sshll.u32 %s601_s26, 4  ;;  %s25_s25 = int_to_ptr.vmem [resolvable:$true] %s24_s25  ;;  %s50_s27 = int_to_ptr.vmem [resolvable:$true] %s49_s27 }
  0x17   :  { %s549_s30 = scalar_lea.hbm %s734_s0, 128 }
  0x18   :  { %p550_p8 = scmp.ne.s32.totalorder %s734_s0, %s549_s30  ;;  %p553_p9 = scmp.lt.u32.totalorder %s549_s30, %s734_s0 }
  0x1a   :  { %p555_p10 = pnand %p553_p9, %p550_p8 }
  0x1c   :  { %558 = shalt.err (!%p555_p10)
}
  0x1d   :  { %s559_s1 = scalar_lea.vmem %s25_s25, 128  ;;  %p564_p12 = scmp.lt.s32.totalorder %s25_s25, %s25_s25 }
  0x1e   :  { %p560_p11 = scmp.ne.s32.totalorder %s25_s25, %s559_s1  ;;  %p565_p13 = scmp.lt.s32.totalorder %s559_s1, %s559_s1 }
  0x20   :  { %p566_p0 = por %p565_p13, %p564_p12 }
  0x22   :  { %p567_p1 = pnand %p566_p0, %p560_p11 }
  0x24   :  { %570 = shalt.err (!%p567_p1)
}
  0x25   :  { %27 = dma.hbm_to_vmem [thread:$0]  %s734_s0, 128, %s25_s25, [#allocation4]  }
  0x26   :  { %s571_s18 = scalar_lea.hbm %s738_s4, 2048 }
  0x27   :  { %p572_p2 = scmp.ne.s32.totalorder %s738_s4, %s571_s18  ;;  %p575_p3 = scmp.lt.u32.totalorder %s571_s18, %s738_s4 }
  0x29   :  { %p577_p4 = pnand %p575_p3, %p572_p2 }
  0x2b   :  { %580 = shalt.err (!%p577_p4)
}
  0x2c   :  { %s581_s24 = scalar_lea.vmem %s50_s27, 2048  ;;  %p586_p6 = scmp.lt.s32.totalorder %s50_s27, %s50_s27 }
  0x2d   :  { %p582_p5 = scmp.ne.s32.totalorder %s50_s27, %s581_s24  ;;  %p587_p7 = scmp.lt.s32.totalorder %s581_s24, %s581_s24 }
  0x2f   :  { %p588_p8 = por %p587_p7, %p586_p6 }
  0x31   :  { %p589_p9 = pnand %p588_p8, %p582_p5 }
  0x33   :  { %592 = shalt.err (!%p589_p9)
}
  0x34   :  { %55 = dma.hbm_to_vmem [thread:$0]  %s738_s4, 2048, %s50_s27, [#allocation6], %s598_s20, %s598_s20, %s599_s21  }
  0x35   :  { %593 = dma.done.wait [#allocation4], 128  }
  0x36   :  { %594 = vsyncadd [#allocation4], 4294967168 }
  0x37   :  { %595 = dma.done.wait [#allocation6], 4096  }
  0x38   :  { %596 = vsyncadd [#allocation6], 4294963200  ;;  %v602_v1 = vmov 0.0|0.0   ;;  %vm603_vm0 = vmmov 0   ;;  %v604_v2 = vmov 0.0   ;;  %v74_v3 = vld [vmem:[#allocation5] sm:$0xff] }
  0x39   :  { %463 = vmatprep.subr.bf16.mxu0 %v602_v1  ;;  %425 = vmatprep.mubr.msk.f32.mxu0 %vm603_vm0, %v604_v2  ;;  %v75_v4 = vld [vmem:[#allocation5 + $0x8] sm:$0xff]  ;;  %v76_v5 = vld [vmem:[#allocation5 + $0x10] sm:$0xff]  ;;  %v77_v7 = vld [vmem:[#allocation5 + $0x18] sm:$0xff]  ;;  %vm348_vm1 = vcmask 7168  }
  0x3a   :  { %487 = vmatprep.subr.bf16.mxu1 %v602_v1  ;;  %460 = vmatprep.mubr.msk.f32.mxu1 %vm603_vm0, %v604_v2  ;;  %v464_v6 = vpack.c.bf16 %v75_v4, %v74_v3  ;;  %v467_v8 = vpack.c.bf16 %v77_v7, %v76_v5  ;;  %v78_v9 = vld [vmem:[#allocation5 + $0x20] sm:$0xff]  ;;  %v79_v10 = vld [vmem:[#allocation5 + $0x28] sm:$0xff]  ;;  %v80_v12 = vld [vmem:[#allocation5 + $0x30] sm:$0xff] }
  0x3b   :  { %v470_v11 = vpack.c.bf16 %v79_v10, %v78_v9  ;;  %v81_v13 = vld [vmem:[#allocation5 + $0x38] sm:$0xff]  ;;  %v82_v15 = vld [vmem:[#allocation5 + $0x40] sm:$0xff]  ;;  %v83_v16 = vld [vmem:[#allocation5 + $0x48] sm:$0xff] }
  0x3c   :  { %465 = vmatpush3.bf16.msra.mxu0 %v464_v6  ;;  %v473_v14 = vpack.c.bf16 %v81_v13, %v80_v12  ;;  %v476_v17 = vpack.c.bf16 %v83_v16, %v82_v15  ;;  %v84_v18 = vld [vmem:[#allocation5 + $0x50] sm:$0xff]  ;;  %v85_v19 = vld [vmem:[#allocation5 + $0x58] sm:$0xff]  ;;  %v86_v21 = vld [vmem:[#allocation5 + $0x60] sm:$0xff] }
  0x3d   :  { %466 = vmatprep.subr.bf16.mxu0 %v602_v1  ;;  %v479_v20 = vpack.c.bf16 %v85_v19, %v84_v18  ;;  %v87_v22 = vld [vmem:[#allocation5 + $0x68] sm:$0xff]  ;;  %v88_v24 = vld [vmem:[#allocation5 + $0x70] sm:$0xff]  ;;  %v89_v25 = vld [vmem:[#allocation5 + $0x78] sm:$0xff] }
  0x3e   :  { %v482_v23 = vpack.c.bf16 %v87_v22, %v86_v21  ;;  %v485_v26 = vpack.c.bf16 %v89_v25, %v88_v24  ;;  %v73_v27 = vld [vmem:[#allocation3] sm:$0xff]  ;;  %v199_v28 = vld [vmem:[#allocation7] sm:$0xff]  ;;  %v200_v29 = vld [vmem:[#allocation7 + $0x8] sm:$0xff] }
  0x3f   :  { %v488_v30 = vpack.c.bf16 %v200_v29, %v199_v28  ;;  %v201_v31 = vld [vmem:[#allocation7 + $0x10] sm:$0xff]  ;;  %v202_v32 = vld [vmem:[#allocation7 + $0x18] sm:$0xff]  ;;  %v203_v34 = vld [vmem:[#allocation7 + $0x20] sm:$0xff] }
  0x40   :  { %468 = vmatpush3.bf16.msra.mxu0 %v467_v8  ;;  %v491_v33 = vpack.c.bf16 %v202_v32, %v201_v31  ;;  %v204_v35 = vld [vmem:[#allocation7 + $0x28] sm:$0xff]  ;;  %v205_v37 = vld [vmem:[#allocation7 + $0x30] sm:$0xff]  ;;  %v206_v38 = vld [vmem:[#allocation7 + $0x38] sm:$0xff]  ;;  %v185_v8 = vlaneseq }
  0x41   :  { %469 = vmatprep.subr.bf16.mxu0 %v602_v1  ;;  %489 = vmatpush3.bf16.msra.mxu1 %v488_v30  ;;  %v494_v36 = vpack.c.bf16 %v204_v35, %v203_v34  ;;  %v497_v39 = vpack.c.bf16 %v206_v38, %v205_v37  ;;  %v207_v40 = vld [vmem:[#allocation7 + $0x40] sm:$0xff]  ;;  %v208_v41 = vld [vmem:[#allocation7 + $0x48] sm:$0xff]  ;;  %v209_v43 = vld [vmem:[#allocation7 + $0x50] sm:$0xff] }
  0x42   :  { %490 = vmatprep.subr.bf16.mxu1 %v602_v1  ;;  %v500_v42 = vpack.c.bf16 %v208_v41, %v207_v40  ;;  %v210_v44 = vld [vmem:[#allocation7 + $0x58] sm:$0xff]  ;;  %v211_v46 = vld [vmem:[#allocation7 + $0x60] sm:$0xff]  ;;  %v212_v47 = vld [vmem:[#allocation7 + $0x68] sm:$0xff]  ;;  %v186_v9 = vshrl.u32 %v185_v8, 7 }
  0x43   :  { %v503_v45 = vpack.c.bf16 %v210_v44, %v209_v43  ;;  %v506_v48 = vpack.c.bf16 %v212_v47, %v211_v46  ;;  %v213_v49 = vld [vmem:[#allocation7 + $0x70] sm:$0xff]  ;;  %v214_v50 = vld [vmem:[#allocation7 + $0x78] sm:$0xff] }
  0x44   :  { %471 = vmatpush3.bf16.msra.mxu0 %v470_v11  ;;  %v509_v51 = vpack.c.bf16 %v214_v50, %v213_v49  ;;  %v160_v10 = vld [vmem:[%s736_s2] sm:$0x1]  ;;  %v187_v11 = vsub.s32 0, %v186_v9 }
  0x45   :  { %472 = vmatprep.subr.bf16.mxu0 %v602_v1  ;;  %492 = vmatpush3.bf16.msra.mxu1 %v491_v33 }
  0x46   :  { %493 = vmatprep.subr.bf16.mxu1 %v602_v1 }
  0x48   :  { %474 = vmatpush3.bf16.msra.mxu0 %v473_v14  ;;  %v161_v14 = vld [vmem:[%s737_s3] sm:$0x1] }
  0x49   :  { %475 = vmatprep.subr.bf16.mxu0 %v602_v1  ;;  %495 = vmatpush3.bf16.msra.mxu1 %v494_v36 }
  0x4a   :  { %496 = vmatprep.subr.bf16.mxu1 %v602_v1 }
  0x4c   :  { %477 = vmatpush3.bf16.msra.mxu0 %v476_v17 }
  0x4d   :  { %478 = vmatprep.subr.bf16.mxu0 %v602_v1  ;;  %498 = vmatpush3.bf16.msra.mxu1 %v497_v39 }
  0x4e   :  { %499 = vmatprep.subr.bf16.mxu1 %v602_v1 }
  0x50   :  { %480 = vmatpush3.bf16.msra.mxu0 %v479_v20 }
  0x51   :  { %481 = vmatprep.subr.bf16.mxu0 %v602_v1  ;;  %501 = vmatpush3.bf16.msra.mxu1 %v500_v42  ;;  %v285_v42 = vld [vmem:[%s739_s5] sm:$0x1] }
  0x52   :  { %502 = vmatprep.subr.bf16.mxu1 %v602_v1 }
  0x54   :  { %483 = vmatpush3.bf16.msra.mxu0 %v482_v23 }
  0x55   :  { %484 = vmatprep.subr.bf16.mxu0 %v602_v1  ;;  %504 = vmatpush3.bf16.msra.mxu1 %v503_v45  ;;  %v286_v45 = vld [vmem:[%s740_s6] sm:$0x1] }
  0x56   :  { %505 = vmatprep.subr.bf16.mxu1 %v602_v1 }
  0x58   :  { %486 = vmatpush3.bf16.msra.mxu0 %v485_v26 }
  0x59   :  { %507 = vmatpush3.bf16.msra.mxu1 %v506_v48 }
  0x5a   :  { %508 = vmatprep.subr.bf16.mxu1 %v602_v1 }
  0x5b   :  { %426 = vmatmul.mubr.f32.vlgmr.msra.gmra.mrb[0].mxu0 %v73_v27 }
  0x5d   :  { %510 = vmatpush3.bf16.msra.mxu1 %v509_v51 }
 0x12e   :  { %v156_v52 = vpop.f32.mrb[0].mxu0 }
 0x12f   :  { %v162_v53 = vrot.slane %v156_v52, 4  ;;  %v168_v54 = vmul.f32 %v156_v52, %v156_v52  ;;  %v427_v55 = vpop.f32.mrb[1].mxu0 }
 0x130   :  { %v357_v55 = vld [vmem:[#allocation2] ss:$0 sm:$0xff] }
 0x131   :  { %v163_v56 = vadd.f32 %v162_v53, %v156_v52  ;;  %v169_v57 = vrot.slane %v168_v54, 4 }
 0x133   :  { %v164_v58 = vrot.slane %v163_v56, 2  ;;  %v170_v59 = vadd.f32 %v169_v57, %v168_v54 }
 0x135   :  { %v165_v60 = vadd.f32 %v164_v58, %v163_v56  ;;  %v171_v61 = vrot.slane %v170_v59, 2 }
 0x137   :  { %v166_v62 = vrot.slane %v165_v60, 1  ;;  %v172_v63 = vadd.f32 %v171_v61, %v170_v59 }
 0x139   :  { %v167_v0 = vadd.f32 %v166_v62, %v165_v60  ;;  %v173_v2 = vrot.slane %v172_v63, 1 }
 0x13b   :  { %v174_v3 = vadd.f32 %v173_v2, %v172_v63  ;;  %v175_v4 = vmul.f32 0.125, %v167_v0 }
 0x13d   :  { %v176_v5 = vmul.f32 0.125, %v174_v3  ;;  %v177_v6 = vmul.f32 %v175_v4, %v175_v4 }
 0x13f   :  { %v178_v1 = vsub.f32 %v176_v5, %v177_v6 }
 0x141   :  { %v179_v7 = vadd.f32 1e-05, %v178_v1 }
 0x143   :  { %519 = vrsqrt.f32 %v179_v7 }
 0x14d   :  { %v520_v12 = vpop.eup %519 }
 0x14e   :  { %v181_v13 = vmul.f32 %v520_v12, %v160_v10 }
 0x150   :  { %v188_v15 = vrot.slane %v181_v13, %v187_v11  ;;  %v182_v16 = vmul.f32 %v181_v13, %v175_v4 }
 0x152   :  { %v183_v17 = vsub.f32 %v161_v14, %v182_v16  ;;  %v190_v18 = vmul.f32 %v188_v15, %v156_v52  ;;  %v356_v52 = vld [vmem:[%s741_s7] ss:$0 sm:$0xff] }
 0x154   :  { %v195_v19 = vrot.slane %v183_v17, %v187_v11 }
 0x156   :  { %v197_v20 = vadd.f32 %v195_v19, %v190_v18 }
 0x158   :  { %v198_v21 = vmax.f32 %v197_v20, 0.0 }
 0x15a   :  { %461 = vmatmul.mubr.f32.vlgmr.msra.gmra.mrb[0].mxu1 %v198_v21 }
 0x22d   :  { %v281_v22 = vpop.f32.mrb[0].mxu1 }
 0x22e   :  { %v287_v23 = vrot.slane %v281_v22, 4  ;;  %v293_v24 = vmul.f32 %v281_v22, %v281_v22  ;;  %v462_v25 = vpop.f32.mrb[1].mxu1 }
 0x230   :  { %v288_v26 = vadd.f32 %v287_v23, %v281_v22  ;;  %v294_v27 = vrot.slane %v293_v24, 4 }
 0x232   :  { %v289_v28 = vrot.slane %v288_v26, 2  ;;  %v295_v29 = vadd.f32 %v294_v27, %v293_v24 }
 0x234   :  { %v290_v30 = vadd.f32 %v289_v28, %v288_v26  ;;  %v296_v31 = vrot.slane %v295_v29, 2 }
 0x236   :  { %v291_v32 = vrot.slane %v290_v30, 1  ;;  %v297_v33 = vadd.f32 %v296_v31, %v295_v29 }
 0x238   :  { %v292_v34 = vadd.f32 %v291_v32, %v290_v30  ;;  %v298_v35 = vrot.slane %v297_v33, 1 }
 0x23a   :  { %v299_v36 = vadd.f32 %v298_v35, %v297_v33  ;;  %v300_v37 = vmul.f32 0.125, %v292_v34 }
 0x23c   :  { %v301_v38 = vmul.f32 0.125, %v299_v36  ;;  %v302_v39 = vmul.f32 %v300_v37, %v300_v37 }
 0x23e   :  { %v303_v40 = vsub.f32 %v301_v38, %v302_v39 }
 0x240   :  { %v304_v41 = vadd.f32 1e-05, %v303_v40 }
 0x242   :  { %521 = vrsqrt.f32 %v304_v41 }
 0x24c   :  { %v522_v43 = vpop.eup %521 }
 0x24d   :  { %v306_v44 = vmul.f32 %v522_v43, %v285_v42 }
 0x24f   :  { %v307_v46 = vmul.f32 %v306_v44, %v300_v37  ;;  %v313_v47 = vrot.slane %v306_v44, %v187_v11 }
 0x251   :  { %v308_v48 = vsub.f32 %v286_v45, %v307_v46  ;;  %v315_v49 = vmul.f32 %v313_v47, %v281_v22 }
 0x253   :  { %v320_v50 = vrot.slane %v308_v48, %v187_v11 }
 0x255   :  { %v322_v51 = vadd.f32 %v320_v50, %v315_v49 }
 0x257   :  { %v323_v53 = vmax.f32 %v322_v51, 0.0 }
 0x259   :  { %v331_v54 = vmul.f32 %v356_v52, %v323_v53 }
 0x25b   :  { %332 = vadd.xlane.f32.xlu0 %v331_v54 }
 0x2e8   :  { %v333_v56 = vpop.xlane.xlu0 %332 }
 0x2e9   :  { %v341_v57 = vadd.f32 %v357_v55, %v333_v56 }
 0x2eb   :  { %v358_v58 = vmul.f32 -1.442695, %v341_v57 }
 0x2ed   :  { %523 = vpow2.f32 %v358_v58 }
 0x2f7   :  { %v524_v59 = vpop.eup %523 }
 0x2f8   :  { %v345_v60 = vadd.f32 1.0, %v524_v59 }
 0x2fa   :  { %525 = vrcp.f32 %v345_v60 }
 0x304   :  { %v526_v61 = vpop.eup %525 }
 0x305   :  { %349 = vst.msk [vmem:[%s743_s9] sm:$0xff] %vm348_vm1, %v526_v61 }
 0x306   :  { %354 = vsyncpa [#allocation4], 1 }
 0x307   :  { %355 = vsyncpa [#allocation6], 1 }

</bundles_post_ra>
